<compile_context>
chip_gen: v7x
topology: tpu7x:2x2x1
jax: 0.10.0
libtpu: 0.0.40
codegen_flags: <defaults>
</compile_context>

<pallas_src>
import jax
import jax.numpy as jnp
from jax.experimental import pallas as pl
from jax.experimental.pallas import tpu as pltpu


def _make_encoder_head_kernel(B, HW, L):
    def kernel(x_ref, w_ref, b_ref, alpha_ref, o_ref):
        # x_ref:     (B*HW, C) f32   backbone features, channels on lanes (C = 11*128)
        # w_ref:     (C, L)    bf16  linear weight (in x out), pre-scaled by 1/(H*W)
        # b_ref:     (1, L)    f32   linear bias
        # alpha_ref: (1,) SMEM f32   shared PReLU slope (nn.PReLU() default: one param)
        # o_ref:     (B, L)    f32   output
        x = x_ref[...].astype(jnp.bfloat16)                       # (B*HW, C)
        # Pooling fused into the matmul: one MXU matmul with M = B*HW.
        z = jnp.dot(x, w_ref[...],
                    preferred_element_type=jnp.float32)           # (B*HW, L) f32
        # AdaptiveAvgPool2d(1): sum the HW rows per batch (1/(H*W) already folded
        # into the weight). Sublane reduce on a (B, HW, L) view -> cheap VPU work.
        pooled = jnp.sum(z.reshape(B, HW, L), axis=1)             # (B, L)
        # Dropout is identity in eval/inference mode.
        y = pooled + b_ref[...]
        alpha = alpha_ref[0]
        o_ref[...] = jnp.where(y >= 0.0, y, alpha * y)            # PReLU
    return kernel


def prepare_encoder_head_params(w, b, alpha, hw):
    """One-time parameter prep (call ONCE, outside the per-step forward):
       w: (C, L) = PyTorch linear weight transposed; b: (L,); alpha: scalar;
       hw: H*W of the backbone feature map."""
    w_prepped = (w.astype(jnp.float32) * (1.0 / hw)).astype(jnp.bfloat16)
    b_prepped = b.reshape(1, -1).astype(jnp.float32)
    alpha_prepped = jnp.asarray(alpha, jnp.float32).reshape(1)
    return w_prepped, b_prepped, alpha_prepped


def encoder_head(features_nhwc, w_prepped, b_prepped, alpha_prepped):
    """features_nhwc: (B, H, W, C) float32 backbone features (NHWC = XLA conv layout).
       Remaining args come from prepare_encoder_head_params."""
    B, H, W, C = features_nhwc.shape
    HW = H * W
    L = w_prepped.shape[1]

    # Free reshape of contiguous NHWC -> (B*HW, C); lane-dense last dim (C = 11*128).
    x = features_nhwc.reshape(B * HW, C)

    return pl.pallas_call(
        _make_encoder_head_kernel(B, HW, L),
        out_shape=jax.ShapeDtypeStruct((B, L), jnp.float32),
        grid_spec=pltpu.PrefetchScalarGridSpec(
            num_scalar_prefetch=0,
            grid=(1,),                                               # single step: one matmul
            in_specs=[
                pl.BlockSpec((B * HW, C), lambda i: (0, 0)),         # contiguous ~180 KB activation
                pl.BlockSpec((C, L), lambda i: (0, 0)),              # full bf16 weight (~720 KB)
                pl.BlockSpec((1, L), lambda i: (0, 0)),              # bias
                pl.BlockSpec(memory_space=pltpu.MemorySpace.SMEM),   # prelu alpha scalar
            ],
            out_specs=pl.BlockSpec((B, L), lambda i: (0, 0)),        # lane-dense 256-wide store
        ),
        compiler_params=pltpu.CompilerParams(
            dimension_semantics=("arbitrary",)),
    )(x, w_prepped, b_prepped, alpha_prepped)


if __name__ == "__main__":
    key = jax.random.PRNGKey(0)
    # Small but module-consistent shapes: EfficientNet-B2 head width 1408,
    # latent 256, tiny spatial grid standing in for the backbone output.
    B, H, W, C = 2, 4, 4, 1408
    L = 256

    k_feat, k_w, k_b = jax.random.split(key, 3)
    feats = jax.random.normal(k_feat, (B, H, W, C), dtype=jnp.float32)     # NHWC
    # Deterministic synthetic parameters (not a checkpoint load).
    w = jax.random.normal(k_w, (C, L), dtype=jnp.float32) * 0.02           # Linear weight (in x out)
    bias = jax.random.normal(k_b, (L,), dtype=jnp.float32) * 0.02          # Linear bias
    alpha = 0.25                                                           # nn.PReLU() default init

    # One-time parameter prep (hoisted out of the per-call path).
    w_p, b_p, a_p = prepare_encoder_head_params(w, bias, alpha, H * W)

    out = encoder_head(feats, w_p, b_p, a_p)
    out = jax.block_until_ready(out)

    # Pure-JAX f32 reference (kernel uses bf16 matmul inputs with f32 MXU
    # accumulation, so tolerance is loosened accordingly).
    pooled = feats.mean(axis=(1, 2))                 # (B, C)   AdaptiveAvgPool2d(1) + flatten
    y = pooled @ w + bias                            # (B, L)   Dropout = identity (eval)
    ref = jnp.where(y >= 0.0, y, alpha * y)          # PReLU

    assert out.shape == (B, L)
    assert jnp.allclose(out, ref, atol=1e-2, rtol=1e-2)
    print("KERNEL_OK")
</pallas_src>

<mosaic_0001>
module attributes {stable_mosaic.version = 11 : i64} {
  func.func @kernel(%arg0: i32, %arg1: memref<32x1408xf32, #tpu.memory_space<vmem>>, %arg2: memref<1408x256xbf16, #tpu.memory_space<vmem>>, %arg3: memref<1x256xf32, #tpu.memory_space<vmem>>, %arg4: memref<1xf32, #tpu.memory_space<smem>>, %arg5: memref<2x256xf32, #tpu.memory_space<vmem>>) attributes {dimension_semantics = [#tpu.dimension_semantics<arbitrary>], iteration_bounds = array<i64: 1>, scalar_prefetch = 0 : i64, scratch_operands = 0 : i64, tpu.core_type = #tpu.core_type<tc>, window_params = [{pipeline_mode = #tpu.pipeline_mode<synchronous>, transform_indices = @transform_0, window_bounds = array<i64: 32, 1408>}, {pipeline_mode = #tpu.pipeline_mode<synchronous>, transform_indices = @transform_1, window_bounds = array<i64: 1408, 256>}, {pipeline_mode = #tpu.pipeline_mode<synchronous>, transform_indices = @transform_2, window_bounds = array<i64: 1, 256>}, {transform_indices = @transform_3, window_bounds = array<i64: 1>}, {pipeline_mode = #tpu.pipeline_mode<synchronous>, transform_indices = @transform_4, window_bounds = array<i64: 2, 256>}]} {
    %c0 = arith.constant 0 : index
    %c0_0 = arith.constant 0 : index
    %0 = vector.load %arg1[%c0, %c0_0] : memref<32x1408xf32, #tpu.memory_space<vmem>>, vector<32x1408xf32>
    %1 = arith.truncf %0 : vector<32x1408xf32> to vector<32x1408xbf16>
    %c0_1 = arith.constant 0 : index
    %c0_2 = arith.constant 0 : index
    %2 = vector.load %arg2[%c0_1, %c0_2] : memref<1408x256xbf16, #tpu.memory_space<vmem>>, vector<1408x256xbf16>
    %cst = arith.constant dense<0.000000e+00> : vector<32x256xf32>
    %3 = tpu.matmul %1, %2, %cst {dimension_numbers = #tpu.dot_dimension_numbers<[1], [0], [0], [1], [0, 0, 1, 1], [], []>} : vector<32x1408xbf16>, vector<1408x256xbf16>, vector<32x256xf32> -> vector<32x256xf32>
    %4 = vector.shape_cast %3 : vector<32x256xf32> to vector<2x16x256xf32>
    %cst_3 = arith.constant dense<0.000000e+00> : vector<2x256xf32>
    %5 = vector.multi_reduction <add>, %4, %cst_3 [1] : vector<2x16x256xf32> to vector<2x256xf32>
    %c0_4 = arith.constant 0 : index
    %c0_5 = arith.constant 0 : index
    %6 = vector.load %arg3[%c0_4, %c0_5] : memref<1x256xf32, #tpu.memory_space<vmem>>, vector<1x256xf32>
    %7 = vector.broadcast %6 : vector<1x256xf32> to vector<2x256xf32>
    %8 = arith.addf %5, %7 : vector<2x256xf32>
    %c0_6 = arith.constant 0 : index
    %9 = memref.load %arg4[%c0_6] : memref<1xf32, #tpu.memory_space<smem>>
    %cst_7 = arith.constant 0.000000e+00 : f32
    %10 = vector.broadcast %cst_7 : f32 to vector<2x256xf32>
    %11 = arith.cmpf oge, %8, %10 : vector<2x256xf32>
    %12 = vector.broadcast %9 : f32 to vector<2x256xf32>
    %13 = arith.mulf %12, %8 : vector<2x256xf32>
    %14 = arith.select %11, %8, %13 : vector<2x256xi1>, vector<2x256xf32>
    %c0_8 = arith.constant 0 : index
    %c0_9 = arith.constant 0 : index
    %15 = vector.load %arg5[%c0_8, %c0_9] : memref<2x256xf32, #tpu.memory_space<vmem>>, vector<2x256xf32>
    tpu.vector_store %arg5[%c0_8, %c0_9], %14 {strides = array<i32>} : memref<2x256xf32, #tpu.memory_space<vmem>>, vector<2x256xf32>,
    return
  }
  func.func @transform_0(%arg0: i32) -> (i32, i32) {
    %c0_i32 = arith.constant 0 : i32
    %c0_i32_0 = arith.constant 0 : i32
    %c0_i32_1 = arith.constant 0 : i32
    return %c0_i32, %c0_i32_0 : i32, i32
  }
  func.func @transform_1(%arg0: i32) -> (i32, i32) {
    %c0_i32 = arith.constant 0 : i32
    %c0_i32_0 = arith.constant 0 : i32
    %c0_i32_1 = arith.constant 0 : i32
    return %c0_i32, %c0_i32_0 : i32, i32
  }
  func.func @transform_2(%arg0: i32) -> (i32, i32) {
    %c0_i32 = arith.constant 0 : i32
    %c0_i32_0 = arith.constant 0 : i32
    %c0_i32_1 = arith.constant 0 : i32
    return %c0_i32, %c0_i32_0 : i32, i32
  }
  func.func @transform_3(%arg0: i32) -> i32 {
    %c0_i32 = arith.constant 0 : i32
    %c0_i32_0 = arith.constant 0 : i32
    return %c0_i32 : i32
  }
  func.func @transform_4(%arg0: i32) -> (i32, i32) {
    %c0_i32 = arith.constant 0 : i32
    %c0_i32_0 = arith.constant 0 : i32
    %c0_i32_1 = arith.constant 0 : i32
    return %c0_i32, %c0_i32_0 : i32, i32
  }
}

</mosaic_0001>

<bundles_post_ra>
// kernel: tpu_custom_call.1
= control target key start
LH: loop header
LB: loop body
LE: loop exit
PB: predicated region body
PF: predicated region fallthrough
CT: control target
= control target key end

     0   :  { %10 = vsyncpa [#allocation4], 0  ;;  %s2234_s0 = inlined_call_operand.hbm [shape: f32[32,1408], index: 0, kind: input, shape index: {}]   ;;  %s2235_s1 = inlined_call_operand.hbm [shape: bf16[1408,256], index: 1, kind: input, shape index: {}]   ;;  %s2236_s2 = inlined_call_operand.vmem [shape: f32[1,256], index: 2, kind: input, shape index: {}]   ;;  %s2237_s3 = inlined_call_operand.<no memory space> [shape: f32[1], index: 3, kind: input, shape index: {}]   ;;  %s2238_s4 = inlined_call_operand.hbm [shape: f32[2,256], index: 4, kind: output, shape index: {}]  }
   0x1   :  { %11 = vsyncpa [#allocation7], 0 }
   0x2   :  { %12 = vsyncpa [#allocation5], 0  ;;  %s2158_s15 = smov [#allocation3]   ;;  %s2086_s19 = scalar_lea.hbm %s2234_s0, 5632 }
   0x3   :  { %s18_s16 = sshll.u32 %s2158_s15, 4  ;;  %p2087_p0 = scmp.ne.s32.totalorder %s2234_s0, %s2086_s19  ;;  %s19_s16 = int_to_ptr.vmem [resolvable:$true] %s18_s16 }
   0x4   :  { %p2090_p1 = scmp.lt.u32.totalorder %s2086_s19, %s2234_s0 }
   0x6   :  { %p2092_p2 = pnand %p2090_p1, %p2087_p0 }
   0x8   :  { %2095 = shalt.err (!%p2092_p2)
}
   0x9   :  { %s2096_s24 = scalar_lea.vmem %s19_s16, 5632  ;;  %p2101_p4 = scmp.lt.s32.totalorder %s19_s16, %s19_s16 }
   0xa   :  { %p2097_p3 = scmp.ne.s32.totalorder %s19_s16, %s2096_s24  ;;  %p2102_p5 = scmp.lt.s32.totalorder %s2096_s24, %s2096_s24 }
   0xc   :  { %p2103_p6 = por %p2102_p5, %p2101_p4 }
   0xe   :  { %p2104_p7 = pnand %p2103_p6, %p2097_p3 }
  0x10   :  { %2107 = shalt.err (!%p2104_p7)
}
  0x11   :  { %s2159_s25 = smov 1408   ;;  %s2160_s26 = smov 88  }
  0x12   :  { %24 = dma.hbm_to_vmem [thread:$0]  %s2234_s0, 5632, %s19_s16, [#allocation4], %s2159_s25, %s2159_s25, %s2160_s26  }
  0x13   :  { %s2161_s29 = smov [#allocation6]   ;;  %s2108_s7 = scalar_lea.hbm %s2235_s1, 22528 }
  0x14   :  { %s30_s30 = sshll.u32 %s2161_s29, 4  ;;  %p2109_p8 = scmp.ne.s32.totalorder %s2235_s1, %s2108_s7  ;;  %s31_s30 = int_to_ptr.vmem [resolvable:$true] %s30_s30 }
  0x15   :  { %p2112_p9 = scmp.lt.u32.totalorder %s2108_s7, %s2235_s1 }
  0x17   :  { %p2114_p10 = pnand %p2112_p9, %p2109_p8 }
  0x19   :  { %2117 = shalt.err (!%p2114_p10)
}
  0x1a   :  { %s2118_s12 = scalar_lea.vmem %s31_s30, 22528  ;;  %p2123_p12 = scmp.lt.s32.totalorder %s31_s30, %s31_s30 }
  0x1b   :  { %p2119_p11 = scmp.ne.s32.totalorder %s31_s30, %s2118_s12  ;;  %p2124_p13 = scmp.lt.s32.totalorder %s2118_s12, %s2118_s12 }
  0x1d   :  { %p2125_p0 = por %p2124_p13, %p2123_p12 }
  0x1f   :  { %p2126_p1 = pnand %p2125_p0, %p2119_p11 }
  0x21   :  { %2129 = shalt.err (!%p2126_p1)
}
  0x22   :  { %s2162_s0 = smov 128   ;;  %s2163_s13 = smov 8  }
  0x23   :  { %36 = dma.hbm_to_vmem [thread:$0]  %s2235_s1, 22528, %s31_s30, [#allocation7], %s2162_s0, %s2162_s0, %s2163_s13  }
  0x24   :  { %2152 = dma.done.wait [#allocation4], 5632  }
  0x25   :  { %2153 = vsyncadd [#allocation4], 4294961664 }
  0x26   :  { %2154 = dma.done.wait [#allocation7], 22528  }
  0x27   :  { %2155 = vsyncadd [#allocation7], 4294944768  ;;  %v1822_v0 = vld [vmem:[#allocation6 + $0x4] ss:$8 sps:$4 sm:$0xff]   ;;  %v1826_v2 = vld [vmem:[#allocation6] ss:$8 sps:$4 sm:$0xff]  }
  0x28   :  { %v1824_v1 = vld [vmem:[#allocation6 + $0x304] ss:$8 sps:$4 sm:$0xff]   ;;  %1170 = vmatprep.subr.bf16.mxu1 %v1822_v0  ;;  %v1827_v3 = vld [vmem:[#allocation6 + $0x300] ss:$8 sps:$4 sm:$0xff]   ;;  %v1828_v4 = vld [vmem:[#allocation6 + $0x14] ss:$8 sps:$4 sm:$0xff]  }
  0x29   :  { %1329 = vmatprep.subr.bf16.mxu0 %v1824_v1  ;;  %1171 = vmatpush1.bf16.msra.mxu1 %v1826_v2  ;;  %v1830_v5 = vld [vmem:[#allocation6 + $0x314] ss:$8 sps:$4 sm:$0xff]   ;;  %v1832_v6 = vld [vmem:[#allocation6 + $0x10] ss:$8 sps:$4 sm:$0xff]   ;;  %v1834_v8 = vld [vmem:[#allocation6 + $0x24] ss:$8 sps:$4 sm:$0xff]  }
  0x2a   :  { %1330 = vmatpush1.bf16.msra.mxu0 %v1827_v3  ;;  %1172 = vmatprep.subr.bf16.mxu1 %v1828_v4  ;;  %v1833_v7 = vld [vmem:[#allocation6 + $0x310] ss:$8 sps:$4 sm:$0xff]   ;;  %v1836_v9 = vld [vmem:[#allocation6 + $0x324] ss:$8 sps:$4 sm:$0xff]   ;;  %v1838_v10 = vld [vmem:[#allocation6 + $0x20] ss:$8 sps:$4 sm:$0xff]  }
  0x2b   :  { %1331 = vmatprep.subr.bf16.mxu0 %v1830_v5  ;;  %v1839_v11 = vld [vmem:[#allocation6 + $0x320] ss:$8 sps:$4 sm:$0xff]   ;;  %v1840_v12 = vld [vmem:[#allocation6 + $0x34] ss:$8 sps:$4 sm:$0xff]   ;;  %v1844_v14 = vld [vmem:[#allocation6 + $0x30] ss:$8 sps:$4 sm:$0xff]  }
  0x2c   :  { %v1842_v13 = vld [vmem:[#allocation6 + $0x334] ss:$8 sps:$4 sm:$0xff]   ;;  %v1845_v15 = vld [vmem:[#allocation6 + $0x330] ss:$8 sps:$4 sm:$0xff]   ;;  %v1846_v16 = vld [vmem:[#allocation6 + $0x44] ss:$8 sps:$4 sm:$0xff]  }
  0x2d   :  { %1173 = vmatpush1.bf16.msra.mxu1 %v1832_v6  ;;  %v1848_v17 = vld [vmem:[#allocation6 + $0x344] ss:$8 sps:$4 sm:$0xff]   ;;  %v1850_v18 = vld [vmem:[#allocation6 + $0x40] ss:$8 sps:$4 sm:$0xff]   ;;  %v1852_v20 = vld [vmem:[#allocation6 + $0x54] ss:$8 sps:$4 sm:$0xff]  }
  0x2e   :  { %1332 = vmatpush1.bf16.msra.mxu0 %v1833_v7  ;;  %1174 = vmatprep.subr.bf16.mxu1 %v1834_v8  ;;  %v1851_v19 = vld [vmem:[#allocation6 + $0x340] ss:$8 sps:$4 sm:$0xff]   ;;  %v1854_v21 = vld [vmem:[#allocation6 + $0x354] ss:$8 sps:$4 sm:$0xff]   ;;  %v1856_v22 = vld [vmem:[#allocation6 + $0x50] ss:$8 sps:$4 sm:$0xff]  }
  0x2f   :  { %1333 = vmatprep.subr.bf16.mxu0 %v1836_v9  ;;  %v1857_v23 = vld [vmem:[#allocation6 + $0x350] ss:$8 sps:$4 sm:$0xff]   ;;  %v1858_v24 = vld [vmem:[#allocation6 + $0x64] ss:$8 sps:$4 sm:$0xff]   ;;  %v1862_v26 = vld [vmem:[#allocation6 + $0x60] ss:$8 sps:$4 sm:$0xff]  }
  0x30   :  { %v1860_v25 = vld [vmem:[#allocation6 + $0x364] ss:$8 sps:$4 sm:$0xff]   ;;  %v1863_v27 = vld [vmem:[#allocation6 + $0x360] ss:$8 sps:$4 sm:$0xff]   ;;  %v1864_v28 = vld [vmem:[#allocation6 + $0x74] ss:$8 sps:$4 sm:$0xff]  }
  0x31   :  { %1175 = vmatpush1.bf16.msra.mxu1 %v1838_v10  ;;  %v1866_v29 = vld [vmem:[#allocation6 + $0x374] ss:$8 sps:$4 sm:$0xff]   ;;  %v1868_v30 = vld [vmem:[#allocation6 + $0x70] ss:$8 sps:$4 sm:$0xff]   ;;  %v1870_v32 = vld [vmem:[#allocation6 + $0x84] ss:$8 sps:$4 sm:$0xff]  }
  0x32   :  { %1334 = vmatpush1.bf16.msra.mxu0 %v1839_v11  ;;  %1176 = vmatprep.subr.bf16.mxu1 %v1840_v12  ;;  %v1869_v31 = vld [vmem:[#allocation6 + $0x370] ss:$8 sps:$4 sm:$0xff]   ;;  %v1872_v33 = vld [vmem:[#allocation6 + $0x384] ss:$8 sps:$4 sm:$0xff]   ;;  %v1874_v34 = vld [vmem:[#allocation6 + $0x80] ss:$8 sps:$4 sm:$0xff]  }
  0x33   :  { %1335 = vmatprep.subr.bf16.mxu0 %v1842_v13  ;;  %v1875_v35 = vld [vmem:[#allocation6 + $0x380] ss:$8 sps:$4 sm:$0xff]   ;;  %v1876_v36 = vld [vmem:[#allocation6 + $0x94] ss:$8 sps:$4 sm:$0xff]   ;;  %v1880_v38 = vld [vmem:[#allocation6 + $0x90] ss:$8 sps:$4 sm:$0xff]  }
  0x34   :  { %v1878_v37 = vld [vmem:[#allocation6 + $0x394] ss:$8 sps:$4 sm:$0xff]   ;;  %v1881_v39 = vld [vmem:[#allocation6 + $0x390] ss:$8 sps:$4 sm:$0xff]   ;;  %v1882_v40 = vld [vmem:[#allocation6 + $0xa4] ss:$8 sps:$4 sm:$0xff]  }
  0x35   :  { %1177 = vmatpush1.bf16.msra.mxu1 %v1844_v14  ;;  %v1884_v41 = vld [vmem:[#allocation6 + $0x3a4] ss:$8 sps:$4 sm:$0xff]   ;;  %v1886_v42 = vld [vmem:[#allocation6 + $0xa0] ss:$8 sps:$4 sm:$0xff]   ;;  %v1888_v44 = vld [vmem:[#allocation6 + $0xb4] ss:$8 sps:$4 sm:$0xff]  }
  0x36   :  { %1336 = vmatpush1.bf16.msra.mxu0 %v1845_v15  ;;  %1178 = vmatprep.subr.bf16.mxu1 %v1846_v16  ;;  %v1887_v43 = vld [vmem:[#allocation6 + $0x3a0] ss:$8 sps:$4 sm:$0xff]   ;;  %v1890_v45 = vld [vmem:[#allocation6 + $0x3b4] ss:$8 sps:$4 sm:$0xff]   ;;  %v1892_v46 = vld [vmem:[#allocation6 + $0xb0] ss:$8 sps:$4 sm:$0xff]  }
  0x37   :  { %1337 = vmatprep.subr.bf16.mxu0 %v1848_v17  ;;  %v1893_v47 = vld [vmem:[#allocation6 + $0x3b0] ss:$8 sps:$4 sm:$0xff]   ;;  %v49_v48 = vld [vmem:[#allocation3 + $0x8] sm:$0xff]  ;;  %v60_v49 = vld [vmem:[#allocation3 + $0x60] sm:$0xff]  ;;  %vm1571_vm4 = vcmask 1041409   ;;  %vm1573_vm5 = vcmask 1043459  }
  0x38   :  { %v1894_v50 = vld [vmem:[#allocation6 + $0xc4] ss:$8 sps:$4 sm:$0xff]   ;;  %v93_v52 = vpack.c.bf16 %v60_v49, %v49_v48  ;;  %v55_v53 = vld [vmem:[#allocation3 + $0x38] sm:$0xff]  ;;  %v66_v54 = vld [vmem:[#allocation3 + $0x90] sm:$0xff]  ;;  %vm1575_vm6 = vcmask 1045509   ;;  %vm1577_vm7 = vcmask 1047559  }
  0x39   :  { %1179 = vmatpush1.bf16.msra.mxu1 %v1850_v18  ;;  %v1896_v51 = vld [vmem:[#allocation6 + $0x3c4] ss:$8 sps:$4 sm:$0xff]   ;;  %v99_v55 = vpack.c.bf16 %v66_v54, %v55_v53  ;;  %v1898_v56 = vld [vmem:[#allocation6 + $0xc0] ss:$8 sps:$4 sm:$0xff]   ;;  %v1900_v58 = vld [vmem:[#allocation6 + $0xd4] ss:$8 sps:$4 sm:$0xff]  }
  0x3a   :  { %1338 = vmatpush1.bf16.msra.mxu0 %v1851_v19  ;;  %1180 = vmatprep.subr.bf16.mxu1 %v1852_v20  ;;  %v1899_v57 = vld [vmem:[#allocation6 + $0x3c0] ss:$8 sps:$4 sm:$0xff]   ;;  %v1902_v59 = vld [vmem:[#allocation6 + $0x3d4] ss:$8 sps:$4 sm:$0xff]   ;;  %v1904_v60 = vld [vmem:[#allocation6 + $0xd0] ss:$8 sps:$4 sm:$0xff]  }
  0x3b   :  { %1339 = vmatprep.subr.bf16.mxu0 %v1854_v21  ;;  %1202 = vmatprep.mubr.bf16.mxu1 %v93_v52  ;;  %v1905_v61 = vld [vmem:[#allocation6 + $0x3d0] ss:$8 sps:$4 sm:$0xff]   ;;  %v1906_v62 = vld [vmem:[#allocation6 + $0xe4] ss:$8 sps:$4 sm:$0xff]   ;;  %v1910_v0 = vld [vmem:[#allocation6 + $0xe0] ss:$8 sps:$4 sm:$0xff]  }
  0x3c   :  { %1361 = vmatprep.mubr.bf16.mxu0 %v99_v55  ;;  %v1908_v63 = vld [vmem:[#allocation6 + $0x3e4] ss:$8 sps:$4 sm:$0xff]   ;;  %v1911_v1 = vld [vmem:[#allocation6 + $0x3e0] ss:$8 sps:$4 sm:$0xff]   ;;  %v1912_v2 = vld [vmem:[#allocation6 + $0xf4] ss:$8 sps:$4 sm:$0xff]  }
  0x3d   :  { %1181 = vmatpush1.bf16.msra.mxu1 %v1856_v22  ;;  %v1914_v3 = vld [vmem:[#allocation6 + $0x3f4] ss:$8 sps:$4 sm:$0xff]   ;;  %v1916_v4 = vld [vmem:[#allocation6 + $0xf0] ss:$8 sps:$4 sm:$0xff]   ;;  %v48_v6 = vld [vmem:[#allocation3] sm:$0xff] }
  0x3e   :  { %1340 = vmatpush1.bf16.msra.mxu0 %v1857_v23  ;;  %1182 = vmatprep.subr.bf16.mxu1 %v1858_v24  ;;  %v1917_v5 = vld [vmem:[#allocation6 + $0x3f0] ss:$8 sps:$4 sm:$0xff]   ;;  %v1920_v7 = vld [vmem:[#allocation6 + $0x104] ss:$8 sps:$4 sm:$0xff]   ;;  %v1918_v12 = vld [vmem:[#allocation6 + $0x100] ss:$8 sps:$4 sm:$0xff]  }
  0x3f   :  { %1341 = vmatprep.subr.bf16.mxu0 %v1860_v25  ;;  %v59_v8 = vld [vmem:[#allocation3 + $0x58] sm:$0xff]  ;;  %v54_v9 = vld [vmem:[#allocation3 + $0x30] sm:$0xff]  ;;  %v65_v10 = vld [vmem:[#allocation3 + $0x88] sm:$0xff] }
  0x40   :  { %v1923_v11 = vld [vmem:[#allocation6 + $0x404] ss:$8 sps:$4 sm:$0xff]   ;;  %v1921_v13 = vld [vmem:[#allocation6 + $0x400] ss:$8 sps:$4 sm:$0xff]   ;;  %v92_v14 = vpack.c.bf16 %v59_v8, %v48_v6  ;;  %v98_v15 = vpack.c.bf16 %v65_v10, %v54_v9  ;;  %v1926_v16 = vld [vmem:[#allocation6 + $0x114] ss:$8 sps:$4 sm:$0xff]  }
  0x41   :  { %1183 = vmatpush1.bf16.msra.mxu1 %v1862_v26  ;;  %v1929_v17 = vld [vmem:[#allocation6 + $0x414] ss:$8 sps:$4 sm:$0xff]   ;;  %v1924_v18 = vld [vmem:[#allocation6 + $0x110] ss:$8 sps:$4 sm:$0xff]   ;;  %v1932_v20 = vld [vmem:[#allocation6 + $0x124] ss:$8 sps:$4 sm:$0xff]  }
  0x42   :  { %1342 = vmatpush1.bf16.msra.mxu0 %v1863_v27  ;;  %1184 = vmatprep.subr.bf16.mxu1 %v1864_v28  ;;  %v1927_v19 = vld [vmem:[#allocation6 + $0x410] ss:$8 sps:$4 sm:$0xff]   ;;  %v1935_v21 = vld [vmem:[#allocation6 + $0x424] ss:$8 sps:$4 sm:$0xff]   ;;  %v1930_v22 = vld [vmem:[#allocation6 + $0x120] ss:$8 sps:$4 sm:$0xff]  }
  0x43   :  { %1343 = vmatprep.subr.bf16.mxu0 %v1866_v29  ;;  %v1933_v23 = vld [vmem:[#allocation6 + $0x420] ss:$8 sps:$4 sm:$0xff]   ;;  %v1938_v24 = vld [vmem:[#allocation6 + $0x134] ss:$8 sps:$4 sm:$0xff]   ;;  %v1936_v26 = vld [vmem:[#allocation6 + $0x130] ss:$8 sps:$4 sm:$0xff]  }
  0x44   :  { %v1941_v25 = vld [vmem:[#allocation6 + $0x434] ss:$8 sps:$4 sm:$0xff]   ;;  %v1939_v27 = vld [vmem:[#allocation6 + $0x430] ss:$8 sps:$4 sm:$0xff]   ;;  %v1944_v28 = vld [vmem:[#allocation6 + $0x144] ss:$8 sps:$4 sm:$0xff]  }
  0x45   :  { %1185 = vmatpush1.bf16.msra.mxu1 %v1868_v30  ;;  %v1947_v29 = vld [vmem:[#allocation6 + $0x444] ss:$8 sps:$4 sm:$0xff]   ;;  %v1942_v30 = vld [vmem:[#allocation6 + $0x140] ss:$8 sps:$4 sm:$0xff]   ;;  %v87_v49 = vld [vmem:[#allocation3 + $0x138] sm:$0xff] }
  0x46   :  { %1344 = vmatpush1.bf16.msra.mxu0 %v1869_v31  ;;  %1186 = vmatprep.subr.bf16.mxu1 %v1870_v32  ;;  %v1945_v31 = vld [vmem:[#allocation6 + $0x440] ss:$8 sps:$4 sm:$0xff]   ;;  %v1950_v32 = vld [vmem:[#allocation6 + $0x154] ss:$8 sps:$4 sm:$0xff]   ;;  %v1960_v54 = vld [vmem:[#allocation6 + $0x170] ss:$8 sps:$4 sm:$0xff]  }
  0x47   :  { %1345 = vmatprep.subr.bf16.mxu0 %v1872_v33  ;;  %v1953_v33 = vld [vmem:[#allocation6 + $0x454] ss:$8 sps:$4 sm:$0xff]   ;;  %v76_v48 = vld [vmem:[#allocation3 + $0xe0] sm:$0xff]  ;;  %v1963_v55 = vld [vmem:[#allocation6 + $0x470] ss:$8 sps:$4 sm:$0xff]  }
  0x48   :  { %v109_v52 = vpack.c.bf16 %v87_v49, %v76_v48  ;;  %v1965_v53 = vld [vmem:[#allocation6 + $0x474] ss:$8 sps:$4 sm:$0xff]   ;;  %v1980_v6 = vld [vmem:[#allocation6 + $0x1a4] ss:$8 sps:$4 sm:$0xff]   ;;  %v1978_v8 = vld [vmem:[#allocation6 + $0x1a0] ss:$8 sps:$4 sm:$0xff]  }
  0x49   :  { %1187 = vmatpush1.bf16.msra.mxu1 %v1874_v34  ;;  %v1948_v34 = vld [vmem:[#allocation6 + $0x150] ss:$8 sps:$4 sm:$0xff]   ;;  %v1981_v9 = vld [vmem:[#allocation6 + $0x4a0] ss:$8 sps:$4 sm:$0xff]   ;;  %v1986_v10 = vld [vmem:[#allocation6 + $0x1b4] ss:$8 sps:$4 sm:$0xff]  }
  0x4a   :  { %1346 = vmatpush1.bf16.msra.mxu0 %v1875_v35  ;;  %1188 = vmatprep.subr.bf16.mxu1 %v1876_v36  ;;  %v1951_v35 = vld [vmem:[#allocation6 + $0x450] ss:$8 sps:$4 sm:$0xff]  }
  0x4b   :  { %1347 = vmatprep.subr.bf16.mxu0 %v1878_v37  ;;  %v71_v36 = vld [vmem:[#allocation3 + $0xb8] sm:$0xff]  ;;  %v82_v37 = vld [vmem:[#allocation3 + $0x110] sm:$0xff] }
  0x4c   :  { %v2020_v48 = vld [vmem:[#allocation6 + $0x210] ss:$8 sps:$4 sm:$0xff]  }
  0x4d   :  { %1189 = vmatpush1.bf16.msra.mxu1 %v1880_v38  ;;  %v1956_v38 = vld [vmem:[#allocation6 + $0x164] ss:$8 sps:$4 sm:$0xff]   ;;  %v2023_v49 = vld [vmem:[#allocation6 + $0x510] ss:$8 sps:$4 sm:$0xff]  }
  0x4e   :  { %1348 = vmatpush1.bf16.msra.mxu0 %v1881_v39  ;;  %1190 = vmatprep.subr.bf16.mxu1 %v1882_v40  ;;  %v1959_v39 = vld [vmem:[#allocation6 + $0x464] ss:$8 sps:$4 sm:$0xff]   ;;  %v104_v40 = vpack.c.bf16 %v82_v37, %v71_v36  ;;  %v2014_v36 = vld [vmem:[#allocation6 + $0x200] ss:$8 sps:$4 sm:$0xff]   ;;  %v79_v37 = vld [vmem:[#allocation3 + $0xf8] sm:$0xff] }
  0x4f   :  { %1349 = vmatprep.subr.bf16.mxu0 %v1884_v41  ;;  %v77_v41 = vld [vmem:[#allocation3 + $0xe8] sm:$0xff] }
  0x51   :  { %1191 = vmatpush1.bf16.msra.mxu1 %v1886_v42  ;;  %v88_v42 = vld [vmem:[#allocation3 + $0x140] sm:$0xff] }
  0x52   :  { %1350 = vmatpush1.bf16.msra.mxu0 %v1887_v43  ;;  %1192 = vmatprep.subr.bf16.mxu1 %v1888_v44  ;;  %v1954_v43 = vld [vmem:[#allocation6 + $0x160] ss:$8 sps:$4 sm:$0xff]  }
  0x53   :  { %1351 = vmatprep.subr.bf16.mxu0 %v1890_v45  ;;  %v1957_v44 = vld [vmem:[#allocation6 + $0x460] ss:$8 sps:$4 sm:$0xff]   ;;  %v110_v45 = vpack.c.bf16 %v88_v42, %v77_v41 }
  0x54   :  { %v73_v41 = vld [vmem:[#allocation3 + $0xc8] sm:$0xff]  ;;  %v84_v42 = vld [vmem:[#allocation3 + $0x120] sm:$0xff] }
  0x55   :  { %1193 = vmatpush1.bf16.msra.mxu1 %v1892_v46  ;;  %v70_v46 = vld [vmem:[#allocation3 + $0xb0] sm:$0xff] }
  0x56   :  { %1352 = vmatpush1.bf16.msra.mxu0 %v1893_v47  ;;  %1194 = vmatprep.subr.bf16.mxu1 %v1894_v50  ;;  %v81_v47 = vld [vmem:[#allocation3 + $0x108] sm:$0xff]  ;;  %v1962_v50 = vld [vmem:[#allocation6 + $0x174] ss:$8 sps:$4 sm:$0xff]  }
  0x57   :  { %1353 = vmatprep.subr.bf16.mxu0 %v1896_v51  ;;  %v103_v51 = vpack.c.bf16 %v81_v47, %v70_v46  ;;  %v106_v47 = vpack.c.bf16 %v84_v42, %v73_v41  ;;  %v2083_v41 = vld [vmem:[#allocation6 + $0x2f0] ss:$8 sps:$4 sm:$0xff]   ;;  %v52_v42 = vld [vmem:[#allocation3 + $0x20] sm:$0xff] }
  0x59   :  { %1195 = vmatpush1.bf16.msra.mxu1 %v1898_v56  ;;  %v51_v56 = vld [vmem:[#allocation3 + $0x18] sm:$0xff] }
  0x5a   :  { %1354 = vmatpush1.bf16.msra.mxu0 %v1899_v57  ;;  %1196 = vmatprep.subr.bf16.mxu1 %v1900_v58  ;;  %v62_v57 = vld [vmem:[#allocation3 + $0x70] sm:$0xff]  ;;  %v1968_v58 = vld [vmem:[#allocation6 + $0x184] ss:$8 sps:$4 sm:$0xff]  }
  0x5b   :  { %1355 = vmatprep.subr.bf16.mxu0 %v1902_v59  ;;  %v1971_v59 = vld [vmem:[#allocation6 + $0x484] ss:$8 sps:$4 sm:$0xff]  }
  0x5d   :  { %1197 = vmatpush1.bf16.msra.mxu1 %v1904_v60  ;;  %v95_v60 = vpack.c.bf16 %v62_v57, %v51_v56 }
  0x5e   :  { %1356 = vmatpush1.bf16.msra.mxu0 %v1905_v61  ;;  %1198 = vmatprep.subr.bf16.mxu1 %v1906_v62  ;;  %v57_v61 = vld [vmem:[#allocation3 + $0x48] sm:$0xff]  ;;  %v68_v62 = vld [vmem:[#allocation3 + $0xa0] sm:$0xff] }
  0x5f   :  { %1357 = vmatprep.subr.bf16.mxu0 %v1908_v63  ;;  %v101_v63 = vpack.c.bf16 %v68_v62, %v57_v61  ;;  %v2029_v61 = vld [vmem:[#allocation6 + $0x520] ss:$8 sps:$4 sm:$0xff]   ;;  %v2034_v62 = vld [vmem:[#allocation6 + $0x234] ss:$8 sps:$4 sm:$0xff]  }
  0x61   :  { %1199 = vmatpush1.bf16.msra.mxu1 %v1910_v0  ;;  %v1966_v0 = vld [vmem:[#allocation6 + $0x180] ss:$8 sps:$4 sm:$0xff]  }
  0x62   :  { %1358 = vmatpush1.bf16.msra.mxu0 %v1911_v1  ;;  %1200 = vmatprep.subr.bf16.mxu1 %v1912_v2  ;;  %v1969_v1 = vld [vmem:[#allocation6 + $0x480] ss:$8 sps:$4 sm:$0xff]   ;;  %v1974_v2 = vld [vmem:[#allocation6 + $0x194] ss:$8 sps:$4 sm:$0xff]  }
  0x63   :  { %1359 = vmatprep.subr.bf16.mxu0 %v1914_v3  ;;  %v1977_v3 = vld [vmem:[#allocation6 + $0x494] ss:$8 sps:$4 sm:$0xff]  }
  0x65   :  { %1201 = vmatpush1.bf16.msra.mxu1 %v1916_v4  ;;  %v1972_v4 = vld [vmem:[#allocation6 + $0x190] ss:$8 sps:$4 sm:$0xff]  }
  0x66   :  { %1360 = vmatpush1.bf16.msra.mxu0 %v1917_v5  ;;  %1223 = vmatprep.subr.bf16.mxu1 %v1920_v7  ;;  %v1975_v5 = vld [vmem:[#allocation6 + $0x490] ss:$8 sps:$4 sm:$0xff]   ;;  %v1983_v7 = vld [vmem:[#allocation6 + $0x4a4] ss:$8 sps:$4 sm:$0xff]  }
  0x67   :  { %1382 = vmatprep.subr.bf16.mxu0 %v1923_v11  ;;  %v1989_v11 = vld [vmem:[#allocation6 + $0x4b4] ss:$8 sps:$4 sm:$0xff]  }
  0x68   :  { %1203 = vmatmul.mubr.bf16.vlgmr.msra.gmra.mrb[0].mxu1 %v92_v14  ;;  %v1992_v14 = vld [vmem:[#allocation6 + $0x1c4] ss:$8 sps:$4 sm:$0xff]  }
  0x69   :  { %1362 = vmatmul.mubr.bf16.vlgmr.msra.gmra.mrb[0].mxu0 %v98_v15  ;;  %1224 = vmatpush1.bf16.msra.mxu1 %v1918_v12  ;;  %v1984_v12 = vld [vmem:[#allocation6 + $0x1b0] ss:$8 sps:$4 sm:$0xff]   ;;  %v1995_v15 = vld [vmem:[#allocation6 + $0x4c4] ss:$8 sps:$4 sm:$0xff]  }
  0x6a   :  { %1383 = vmatpush1.bf16.msra.mxu0 %v1921_v13  ;;  %1225 = vmatprep.subr.bf16.mxu1 %v1926_v16  ;;  %v1987_v13 = vld [vmem:[#allocation6 + $0x4b0] ss:$8 sps:$4 sm:$0xff]   ;;  %v1990_v16 = vld [vmem:[#allocation6 + $0x1c0] ss:$8 sps:$4 sm:$0xff]  }
  0x6b   :  { %1384 = vmatprep.subr.bf16.mxu0 %v1929_v17  ;;  %1212 = vmatprep.mubr.bf16.mxu1 %v104_v40  ;;  %v1993_v17 = vld [vmem:[#allocation6 + $0x4c0] ss:$8 sps:$4 sm:$0xff]  }
  0x6c   :  { %1371 = vmatprep.mubr.bf16.mxu0 %v110_v45  ;;  %v2025_v45 = vld [vmem:[#allocation6 + $0x514] ss:$8 sps:$4 sm:$0xff]  }
  0x6d   :  { %1226 = vmatpush1.bf16.msra.mxu1 %v1924_v18  ;;  %v1998_v18 = vld [vmem:[#allocation6 + $0x1d4] ss:$8 sps:$4 sm:$0xff]  }
  0x6e   :  { %1385 = vmatpush1.bf16.msra.mxu0 %v1927_v19  ;;  %1227 = vmatprep.subr.bf16.mxu1 %v1932_v20  ;;  %v2001_v19 = vld [vmem:[#allocation6 + $0x4d4] ss:$8 sps:$4 sm:$0xff]   ;;  %v1996_v20 = vld [vmem:[#allocation6 + $0x1d0] ss:$8 sps:$4 sm:$0xff]  }
  0x6f   :  { %1386 = vmatprep.subr.bf16.mxu0 %v1935_v21  ;;  %v1999_v21 = vld [vmem:[#allocation6 + $0x4d0] ss:$8 sps:$4 sm:$0xff]  }
  0x70   :  { %1213 = vmatmul.mubr.bf16.gmra.mrb[4].mxu1 %v103_v51  ;;  %v89_v51 = vld [vmem:[#allocation3 + $0x148] sm:$0xff] }
  0x71   :  { %1228 = vmatpush1.bf16.msra.mxu1 %v1930_v22  ;;  %1372 = vmatmul.mubr.bf16.gmra.mrb[4].mxu0 %v109_v52  ;;  %v2004_v22 = vld [vmem:[#allocation6 + $0x1e4] ss:$8 sps:$4 sm:$0xff]  }
  0x72   :  { %1387 = vmatpush1.bf16.msra.mxu0 %v1933_v23  ;;  %1229 = vmatprep.subr.bf16.mxu1 %v1938_v24  ;;  %v2007_v23 = vld [vmem:[#allocation6 + $0x4e4] ss:$8 sps:$4 sm:$0xff]   ;;  %v2002_v24 = vld [vmem:[#allocation6 + $0x1e0] ss:$8 sps:$4 sm:$0xff]  }
  0x73   :  { %1388 = vmatprep.subr.bf16.mxu0 %v1941_v25  ;;  %1255 = vmatprep.mubr.bf16.mxu1 %v95_v60  ;;  %v2005_v25 = vld [vmem:[#allocation6 + $0x4e0] ss:$8 sps:$4 sm:$0xff]  }
  0x74   :  { %1414 = vmatprep.mubr.bf16.mxu0 %v101_v63  ;;  %v72_v52 = vld [vmem:[#allocation3 + $0xc0] sm:$0xff]  ;;  %v2037_v63 = vld [vmem:[#allocation6 + $0x534] ss:$8 sps:$4 sm:$0xff]  }
  0x75   :  { %1230 = vmatpush1.bf16.msra.mxu1 %v1936_v26  ;;  %v2010_v26 = vld [vmem:[#allocation6 + $0x1f4] ss:$8 sps:$4 sm:$0xff]   ;;  %v2026_v60 = vld [vmem:[#allocation6 + $0x220] ss:$8 sps:$4 sm:$0xff]  }
  0x76   :  { %1389 = vmatpush1.bf16.msra.mxu0 %v1939_v27  ;;  %1231 = vmatprep.subr.bf16.mxu1 %v1944_v28  ;;  %v2013_v27 = vld [vmem:[#allocation6 + $0x4f4] ss:$8 sps:$4 sm:$0xff]   ;;  %v2008_v28 = vld [vmem:[#allocation6 + $0x1f0] ss:$8 sps:$4 sm:$0xff]  }
  0x77   :  { %1390 = vmatprep.subr.bf16.mxu0 %v1947_v29  ;;  %v2011_v29 = vld [vmem:[#allocation6 + $0x4f0] ss:$8 sps:$4 sm:$0xff]  }
  0x79   :  { %1232 = vmatpush1.bf16.msra.mxu1 %v1942_v30  ;;  %v50_v30 = vld [vmem:[#allocation3 + $0x10] sm:$0xff] }
  0x7a   :  { %1391 = vmatpush1.bf16.msra.mxu0 %v1945_v31  ;;  %1233 = vmatprep.subr.bf16.mxu1 %v1950_v32  ;;  %v61_v31 = vld [vmem:[#allocation3 + $0x68] sm:$0xff]  ;;  %v56_v32 = vld [vmem:[#allocation3 + $0x40] sm:$0xff] }
  0x7b   :  { %1392 = vmatprep.subr.bf16.mxu0 %v1953_v33  ;;  %v67_v33 = vld [vmem:[#allocation3 + $0x98] sm:$0xff] }
  0x7c   :  { %v100_v40 = vpack.c.bf16 %v67_v33, %v56_v32  ;;  %v2073_v32 = vld [vmem:[#allocation6 + $0x2b4] ss:$8 sps:$4 sm:$0xff]   ;;  %v2071_v33 = vld [vmem:[#allocation6 + $0x2b0] ss:$8 sps:$4 sm:$0xff]  }
  0x7d   :  { %1234 = vmatpush1.bf16.msra.mxu1 %v1948_v34  ;;  %v2016_v34 = vld [vmem:[#allocation6 + $0x204] ss:$8 sps:$4 sm:$0xff]  }
  0x7e   :  { %1393 = vmatpush1.bf16.msra.mxu0 %v1951_v35  ;;  %1235 = vmatprep.subr.bf16.mxu1 %v1956_v38  ;;  %v2019_v35 = vld [vmem:[#allocation6 + $0x504] ss:$8 sps:$4 sm:$0xff]   ;;  %v90_v38 = vld [vmem:[#allocation3 + $0x150] sm:$0xff] }
  0x7f   :  { %1394 = vmatprep.subr.bf16.mxu0 %v1959_v39  ;;  %v94_v39 = vpack.c.bf16 %v61_v31, %v50_v30  ;;  %v112_v46 = vpack.c.bf16 %v90_v38, %v79_v37  ;;  %v2068_v31 = vld [vmem:[#allocation6 + $0x2a0] ss:$8 sps:$4 sm:$0xff]   ;;  %v2077_v37 = vld [vmem:[#allocation6 + $0x2d0] ss:$8 sps:$4 sm:$0xff]   ;;  %v2082_v38 = vld [vmem:[#allocation6 + $0x2e4] ss:$8 sps:$4 sm:$0xff]  }
  0x81   :  { %1236 = vmatpush1.bf16.msra.mxu1 %v1954_v43  ;;  %v2017_v43 = vld [vmem:[#allocation6 + $0x500] ss:$8 sps:$4 sm:$0xff]  }
  0x82   :  { %1395 = vmatpush1.bf16.msra.mxu0 %v1957_v44  ;;  %1237 = vmatprep.subr.bf16.mxu1 %v1962_v50  ;;  %v2022_v44 = vld [vmem:[#allocation6 + $0x214] ss:$8 sps:$4 sm:$0xff]  }
  0x83   :  { %1396 = vmatprep.subr.bf16.mxu0 %v1965_v53  ;;  %v78_v50 = vld [vmem:[#allocation3 + $0xf0] sm:$0xff]  ;;  %v83_v53 = vld [vmem:[#allocation3 + $0x118] sm:$0xff] }
  0x84   :  { %v111_v56 = vpack.c.bf16 %v89_v51, %v78_v50  ;;  %v105_v57 = vpack.c.bf16 %v83_v53, %v72_v52 }
  0x85   :  { %1238 = vmatpush1.bf16.msra.mxu1 %v1960_v54  ;;  %v2028_v54 = vld [vmem:[#allocation6 + $0x224] ss:$8 sps:$4 sm:$0xff]  }
  0x86   :  { %1397 = vmatpush1.bf16.msra.mxu0 %v1963_v55  ;;  %1239 = vmatprep.subr.bf16.mxu1 %v1968_v58  ;;  %v2031_v55 = vld [vmem:[#allocation6 + $0x524] ss:$8 sps:$4 sm:$0xff]  }
  0x87   :  { %1398 = vmatprep.subr.bf16.mxu0 %v1971_v59  ;;  %v53_v58 = vld [vmem:[#allocation3 + $0x28] sm:$0xff]  ;;  %v64_v59 = vld [vmem:[#allocation3 + $0x80] sm:$0xff] }
  0x89   :  { %1240 = vmatpush1.bf16.msra.mxu1 %v1966_v0  ;;  %v97_v0 = vpack.c.bf16 %v64_v59, %v53_v58 }
  0x8a   :  { %1399 = vmatpush1.bf16.msra.mxu0 %v1969_v1  ;;  %1241 = vmatprep.subr.bf16.mxu1 %v1974_v2  ;;  %v2032_v1 = vld [vmem:[#allocation6 + $0x230] ss:$8 sps:$4 sm:$0xff]  }
  0x8b   :  { %1400 = vmatprep.subr.bf16.mxu0 %v1977_v3  ;;  %v2035_v2 = vld [vmem:[#allocation6 + $0x530] ss:$8 sps:$4 sm:$0xff]   ;;  %v2040_v3 = vld [vmem:[#allocation6 + $0x244] ss:$8 sps:$4 sm:$0xff]  }
  0x8d   :  { %1242 = vmatpush1.bf16.msra.mxu1 %v1972_v4  ;;  %v2043_v4 = vld [vmem:[#allocation6 + $0x544] ss:$8 sps:$4 sm:$0xff]  }
  0x8e   :  { %1401 = vmatpush1.bf16.msra.mxu0 %v1975_v5  ;;  %1243 = vmatprep.subr.bf16.mxu1 %v1980_v6  ;;  %v2164_v5 = vmov 0   ;;  %v2038_v6 = vld [vmem:[#allocation6 + $0x240] ss:$8 sps:$4 sm:$0xff]  }
  0x8f   :  { %1402 = vmatprep.subr.bf16.mxu0 %v1983_v7  ;;  %v2041_v7 = vld [vmem:[#allocation6 + $0x540] ss:$8 sps:$4 sm:$0xff]  }
  0x91   :  { %1244 = vmatpush1.bf16.msra.mxu1 %v1978_v8  ;;  %v2046_v8 = vld [vmem:[#allocation6 + $0x254] ss:$8 sps:$4 sm:$0xff]  }
  0x92   :  { %1403 = vmatpush1.bf16.msra.mxu0 %v1981_v9  ;;  %1245 = vmatprep.subr.bf16.mxu1 %v1986_v10  ;;  %v2049_v9 = vld [vmem:[#allocation6 + $0x554] ss:$8 sps:$4 sm:$0xff]   ;;  %v2044_v10 = vld [vmem:[#allocation6 + $0x250] ss:$8 sps:$4 sm:$0xff]  }
  0x93   :  { %1404 = vmatprep.subr.bf16.mxu0 %v1989_v11  ;;  %v2047_v11 = vld [vmem:[#allocation6 + $0x550] ss:$8 sps:$4 sm:$0xff]  }
  0x95   :  { %1246 = vmatpush1.bf16.msra.mxu1 %v1984_v12  ;;  %v2052_v12 = vld [vmem:[#allocation6 + $0x264] ss:$8 sps:$4 sm:$0xff]  }
  0x96   :  { %1405 = vmatpush1.bf16.msra.mxu0 %v1987_v13  ;;  %1247 = vmatprep.subr.bf16.mxu1 %v1992_v14  ;;  %v2055_v13 = vld [vmem:[#allocation6 + $0x564] ss:$8 sps:$4 sm:$0xff]   ;;  %v2050_v14 = vld [vmem:[#allocation6 + $0x260] ss:$8 sps:$4 sm:$0xff]  }
  0x97   :  { %1406 = vmatprep.subr.bf16.mxu0 %v1995_v15  ;;  %v2053_v15 = vld [vmem:[#allocation6 + $0x560] ss:$8 sps:$4 sm:$0xff]  }
  0x99   :  { %1248 = vmatpush1.bf16.msra.mxu1 %v1990_v16  ;;  %v2058_v16 = vld [vmem:[#allocation6 + $0x274] ss:$8 sps:$4 sm:$0xff]  }
  0x9a   :  { %1407 = vmatpush1.bf16.msra.mxu0 %v1993_v17  ;;  %1249 = vmatprep.subr.bf16.mxu1 %v1998_v18  ;;  %v2061_v17 = vld [vmem:[#allocation6 + $0x574] ss:$8 sps:$4 sm:$0xff]   ;;  %v2056_v18 = vld [vmem:[#allocation6 + $0x270] ss:$8 sps:$4 sm:$0xff]  }
  0x9b   :  { %1408 = vmatprep.subr.bf16.mxu0 %v2001_v19  ;;  %v2059_v19 = vld [vmem:[#allocation6 + $0x570] ss:$8 sps:$4 sm:$0xff]  }
  0x9d   :  { %1250 = vmatpush1.bf16.msra.mxu1 %v1996_v20  ;;  %v58_v20 = vld [vmem:[#allocation3 + $0x50] sm:$0xff] }
  0x9e   :  { %1409 = vmatpush1.bf16.msra.mxu0 %v1999_v21  ;;  %1251 = vmatprep.subr.bf16.mxu1 %v2004_v22  ;;  %v69_v21 = vld [vmem:[#allocation3 + $0xa8] sm:$0xff] }
  0x9f   :  { %1410 = vmatprep.subr.bf16.mxu0 %v2007_v23  ;;  %v2064_v22 = vld [vmem:[#allocation6 + $0x284] ss:$8 sps:$4 sm:$0xff]   ;;  %v102_v23 = vpack.c.bf16 %v69_v21, %v58_v20  ;;  %v1516_v20 = vld [vmem:[%s2236_s2] sm:$0x3]  ;;  %s2166_s2 = smov [#allocation8]  }
  0xa1   :  { %1252 = vmatpush1.bf16.msra.mxu1 %v2002_v24  ;;  %v2062_v24 = vld [vmem:[#allocation6 + $0x280] ss:$8 sps:$4 sm:$0xff]  }
  0xa2   :  { %1411 = vmatpush1.bf16.msra.mxu0 %v2005_v25  ;;  %1253 = vmatprep.subr.bf16.mxu1 %v2010_v26  ;;  %v2067_v25 = vld [vmem:[#allocation6 + $0x294] ss:$8 sps:$4 sm:$0xff]   ;;  %v2065_v26 = vld [vmem:[#allocation6 + $0x290] ss:$8 sps:$4 sm:$0xff]  }
  0xa3   :  { %1412 = vmatprep.subr.bf16.mxu0 %v2013_v27  ;;  %v80_v27 = vld [vmem:[#allocation3 + $0x100] sm:$0xff] }
  0xa5   :  { %1254 = vmatpush1.bf16.msra.mxu1 %v2008_v28  ;;  %v91_v28 = vld [vmem:[#allocation3 + $0x158] sm:$0xff] }
  0xa6   :  { %1413 = vmatpush1.bf16.msra.mxu0 %v2011_v29  ;;  %1276 = vmatprep.subr.bf16.mxu1 %v2016_v34  ;;  %v2070_v29 = vld [vmem:[#allocation6 + $0x2a4] ss:$8 sps:$4 sm:$0xff]   ;;  %v113_v30 = vpack.c.bf16 %v91_v28, %v80_v27 }
  0xa7   :  { %1435 = vmatprep.subr.bf16.mxu0 %v2019_v35  ;;  %v2076_v34 = vld [vmem:[#allocation6 + $0x2c4] ss:$8 sps:$4 sm:$0xff]   ;;  %v2074_v35 = vld [vmem:[#allocation6 + $0x2c0] ss:$8 sps:$4 sm:$0xff]  }
  0xa8   :  { %1256 = vmatmul.mubr.bf16.vlgmr.msra.gmra.mrb[0].mxu1 %v94_v39  ;;  %v2080_v39 = vld [vmem:[#allocation6 + $0x2e0] ss:$8 sps:$4 sm:$0xff]  }
  0xa9   :  { %1415 = vmatmul.mubr.bf16.vlgmr.msra.gmra.mrb[0].mxu0 %v100_v40  ;;  %1277 = vmatpush1.bf16.msra.mxu1 %v2014_v36  ;;  %v2079_v36 = vld [vmem:[#allocation6 + $0x2d4] ss:$8 sps:$4 sm:$0xff]  }
  0xaa   :  { %1436 = vmatpush1.bf16.msra.mxu0 %v2017_v43  ;;  %1278 = vmatprep.subr.bf16.mxu1 %v2022_v44  ;;  %v2085_v40 = vld [vmem:[#allocation6 + $0x2f4] ss:$8 sps:$4 sm:$0xff]  }
  0xab   :  { %1437 = vmatprep.subr.bf16.mxu0 %v2025_v45  ;;  %1424 = vmatprep.mubr.bf16.mxu0 %v112_v46  ;;  %v63_v43 = vld [vmem:[#allocation3 + $0x78] sm:$0xff]  ;;  %v86_v45 = vld [vmem:[#allocation3 + $0x130] sm:$0xff] }
  0xac   :  { %1265 = vmatprep.mubr.bf16.mxu1 %v106_v47  ;;  %v75_v44 = vld [vmem:[#allocation3 + $0xd8] sm:$0xff]  ;;  %v96_v46 = vpack.c.bf16 %v63_v43, %v52_v42 }
  0xad   :  { %1279 = vmatpush1.bf16.msra.mxu1 %v2020_v48  ;;  %v108_v47 = vpack.c.bf16 %v86_v45, %v75_v44  ;;  %v74_v48 = vld [vmem:[#allocation3 + $0xd0] sm:$0xff] }
  0xae   :  { %1438 = vmatpush1.bf16.msra.mxu0 %v2023_v49  ;;  %1280 = vmatprep.subr.bf16.mxu1 %v2028_v54  ;;  %v85_v49 = vld [vmem:[#allocation3 + $0x128] sm:$0xff] }
  0xaf   :  { %1439 = vmatprep.subr.bf16.mxu0 %v2031_v55  ;;  %v107_v50 = vpack.c.bf16 %v85_v49, %v74_v48 }
  0xb0   :  { %1266 = vmatmul.mubr.bf16.gmra.mrb[4].mxu1 %v105_v57 }
  0xb1   :  { %1425 = vmatmul.mubr.bf16.gmra.mrb[4].mxu0 %v111_v56  ;;  %1281 = vmatpush1.bf16.msra.mxu1 %v2026_v60 }
  0xb2   :  { %1440 = vmatpush1.bf16.msra.mxu0 %v2029_v61  ;;  %1282 = vmatprep.subr.bf16.mxu1 %v2034_v62 }
  0xb3   :  { %1441 = vmatprep.subr.bf16.mxu0 %v2037_v63  ;;  %1467 = vmatprep.mubr.bf16.mxu0 %v2164_v5 }
  0xb4   :  { %1308 = vmatprep.mubr.bf16.mxu1 %v97_v0 }
  0xb5   :  { %1283 = vmatpush1.bf16.msra.mxu1 %v2032_v1  ;;  %v1518_v1 = vlaneseq }
  0xb6   :  { %1442 = vmatpush1.bf16.msra.mxu0 %v2035_v2  ;;  %1284 = vmatprep.subr.bf16.mxu1 %v2040_v3 }
  0xb7   :  { %1443 = vmatprep.subr.bf16.mxu0 %v2043_v4 }
  0xb9   :  { %1285 = vmatpush1.bf16.msra.mxu1 %v2038_v6 }
  0xba   :  { %1444 = vmatpush1.bf16.msra.mxu0 %v2041_v7  ;;  %1286 = vmatprep.subr.bf16.mxu1 %v2046_v8  ;;  %v1519_v7 = vshrl.u32 %v1518_v1, 7 }
  0xbb   :  { %1445 = vmatprep.subr.bf16.mxu0 %v2049_v9 }
  0xbd   :  { %1287 = vmatpush1.bf16.msra.mxu1 %v2044_v10 }
  0xbe   :  { %1446 = vmatpush1.bf16.msra.mxu0 %v2047_v11  ;;  %1288 = vmatprep.subr.bf16.mxu1 %v2052_v12 }
  0xbf   :  { %1447 = vmatprep.subr.bf16.mxu0 %v2055_v13 }
  0xc1   :  { %1289 = vmatpush1.bf16.msra.mxu1 %v2050_v14 }
  0xc2   :  { %1448 = vmatpush1.bf16.msra.mxu0 %v2053_v15  ;;  %1290 = vmatprep.subr.bf16.mxu1 %v2058_v16 }
  0xc3   :  { %1449 = vmatprep.subr.bf16.mxu0 %v2061_v17  ;;  %v1520_v17 = vsub.s32 0, %v1519_v7 }
  0xc5   :  { %1291 = vmatpush1.bf16.msra.mxu1 %v2056_v18 }
  0xc6   :  { %1450 = vmatpush1.bf16.msra.mxu0 %v2059_v19  ;;  %1292 = vmatprep.subr.bf16.mxu1 %v2064_v22  ;;  %v1524_v22 = vsub.s32 1, %v1519_v7 }
  0xc9   :  { %1468 = vmatmul.mubr.bf16.vlgmr.msra.gmra.mrb[0].mxu0 %v102_v23  ;;  %1293 = vmatpush1.bf16.msra.mxu1 %v2062_v24 }
  0xca   :  { %1477 = vmatprep.mubr.bf16.mxu0 %v2164_v5  ;;  %1294 = vmatprep.subr.bf16.mxu1 %v2067_v25 }
  0xcd   :  { %1295 = vmatpush1.bf16.msra.mxu1 %v2065_v26 }
  0xce   :  { %1296 = vmatprep.subr.bf16.mxu1 %v2070_v29  ;;  %v1521_v29 = vrot.slane %v1516_v20, %v1520_v17 }
  0xd1   :  { %1478 = vmatmul.mubr.bf16.gmra.mrb[4].mxu0 %v113_v30  ;;  %1297 = vmatpush1.bf16.msra.mxu1 %v2068_v31 }
  0xd2   :  { %1298 = vmatprep.subr.bf16.mxu1 %v2073_v32  ;;  %v1525_v32 = vrot.slane %v1516_v20, %v1524_v22 }
  0xd5   :  { %1299 = vmatpush1.bf16.msra.mxu1 %v2071_v33 }
  0xd6   :  { %1300 = vmatprep.subr.bf16.mxu1 %v2076_v34 }
  0xd9   :  { %1301 = vmatpush1.bf16.msra.mxu1 %v2074_v35 }
  0xda   :  { %1302 = vmatprep.subr.bf16.mxu1 %v2079_v36  ;;  %v1537_v36 = vstv %s2237_s3  ;;  %s1587_s3 = sshll.u32 %s2166_s2, 4  ;;  %s1588_s3 = int_to_ptr.vmem [resolvable:$true] %s1587_s3 }
  0xdb   :  { %s2130_s19 = scalar_lea.vmem %s1588_s3, 64  ;;  %p2135_p3 = scmp.lt.s32.totalorder %s1588_s3, %s1588_s3 }
  0xdc   :  { %p2131_p2 = scmp.ne.s32.totalorder %s1588_s3, %s2130_s19  ;;  %p2136_p4 = scmp.lt.s32.totalorder %s2130_s19, %s2130_s19 }
  0xdd   :  { %1303 = vmatpush1.bf16.msra.mxu1 %v2077_v37 }
  0xde   :  { %1304 = vmatprep.subr.bf16.mxu1 %v2082_v38  ;;  %p2137_p5 = por %p2136_p4, %p2135_p3 }
  0xe0   :  { %p2138_p6 = pnand %p2137_p5, %p2131_p2 }
  0xe1   :  { %1305 = vmatpush1.bf16.msra.mxu1 %v2080_v39 }
  0xe2   :  { %1306 = vmatprep.subr.bf16.mxu1 %v2085_v40 }
  0xe5   :  { %1307 = vmatpush1.bf16.msra.mxu1 %v2083_v41 }
  0xe8   :  { %1309 = vmatmul.mubr.bf16.vlgmr.msra.gmra.mrb[0].mxu1 %v96_v46 }
  0xe9   :  { %1318 = vmatprep.mubr.bf16.mxu1 %v108_v47 }
  0xf0   :  { %1319 = vmatmul.mubr.bf16.gmra.mrb[4].mxu1 %v107_v50 }
 0x19c   :  { %v1469_v51 = vpop.f32.mrb[0].mxu0 }
 0x19d   :  { %v1471_v52 = vpop.f32.mrb[1].mxu0 }
 0x19e   :  { %v1473_v53 = vpop.f32.mrb[2].mxu0 }
 0x19f   :  { %v1475_v54 = vpop.f32.mrb[3].mxu0 }
 0x1a4   :  { %v1479_v55 = vpop.f32.mrb[4].mxu0 }
 0x1a5   :  { %v1481_v56 = vpop.f32.mrb[5].mxu0 }
 0x1a6   :  { %v1483_v57 = vpop.f32.mrb[6].mxu0 }
 0x1a7   :  { %v1485_v58 = vpop.f32.mrb[7].mxu0 }
 0x1bb   :  { %v1310_v59 = vpop.f32.mrb[0].mxu1 }
 0x1bc   :  { %v1773_v60 = vadd.f32 %v1469_v51, %v1310_v59  ;;  %v1312_v61 = vpop.f32.mrb[1].mxu1 }
 0x1bd   :  { %v1774_v62 = vadd.f32 %v1471_v52, %v1312_v61  ;;  %v1314_v63 = vpop.f32.mrb[2].mxu1 }
 0x1be   :  { %v1775_v0 = vadd.f32 %v1473_v53, %v1314_v63  ;;  %v1316_v2 = vpop.f32.mrb[3].mxu1  ;;  %v2165_v53 = vmov 1983009808  }
 0x1bf   :  { %v1776_v3 = vadd.f32 %v1475_v54, %v1316_v2  ;;  %v1552_v54 = vunpack.c.l.s4 %v2165_v53 }
 0x1c0   :  { %v1488_v4 = vadd.f32 %v1775_v0, %v1773_v60 }
 0x1c1   :  { %v1495_v5 = vadd.f32 %v1776_v3, %v1774_v62  ;;  %v1553_v59 = vunpack.c.0.s8 %v1552_v54 }
 0x1c2   :  { %v1489_v6 = vrot.slane %v1488_v4, 4 }
 0x1c3   :  { %v1496_v8 = vrot.slane %v1495_v5, 4  ;;  %v1320_v9 = vpop.f32.mrb[4].mxu1  ;;  %v1556_v63 = vsub.s32 %v1553_v59, %v1519_v7 }
 0x1c4   :  { %v1490_v10 = vadd.f32 %v1489_v6, %v1488_v4  ;;  %v1777_v11 = vadd.f32 %v1479_v55, %v1320_v9  ;;  %v1322_v12 = vpop.f32.mrb[5].mxu1 }
 0x1c5   :  { %v1497_v13 = vadd.f32 %v1496_v8, %v1495_v5  ;;  %v1778_v14 = vadd.f32 %v1481_v56, %v1322_v12  ;;  %v1324_v15 = vpop.f32.mrb[6].mxu1 }
 0x1c6   :  { %v1491_v16 = vrot.slane %v1490_v10, 2  ;;  %v1779_v18 = vadd.f32 %v1483_v57, %v1324_v15  ;;  %v1326_v19 = vpop.f32.mrb[7].mxu1 }
 0x1c7   :  { %v1498_v21 = vrot.slane %v1497_v13, 2  ;;  %v1780_v23 = vadd.f32 %v1485_v58, %v1326_v19 }
 0x1c8   :  { %v1492_v24 = vadd.f32 %v1491_v16, %v1490_v10  ;;  %v1502_v25 = vadd.f32 %v1779_v18, %v1777_v11 }
 0x1c9   :  { %v1499_v26 = vadd.f32 %v1498_v21, %v1497_v13  ;;  %v1509_v27 = vadd.f32 %v1780_v23, %v1778_v14 }
 0x1ca   :  { %v1493_v28 = vrot.slane %v1492_v24, 1  ;;  %v1503_v30 = vrot.slane %v1502_v25, 4 }
 0x1cb   :  { %v1500_v31 = vrot.slane %v1499_v26, 1  ;;  %v1510_v33 = vrot.slane %v1509_v27, 4 }
 0x1cc   :  { %v1494_v34 = vadd.f32 %v1493_v28, %v1492_v24  ;;  %v1504_v35 = vadd.f32 %v1503_v30, %v1502_v25 }
 0x1cd   :  { %v1501_v37 = vadd.f32 %v1500_v31, %v1499_v26  ;;  %v1511_v38 = vadd.f32 %v1510_v33, %v1509_v27 }
 0x1ce   :  { %v1528_v39 = vadd.f32 %v1521_v29, %v1494_v34  ;;  %v1505_v40 = vrot.slane %v1504_v35, 2 }
 0x1cf   :  { %v1529_v41 = vadd.f32 %v1525_v32, %v1501_v37  ;;  %v1512_v42 = vrot.slane %v1511_v38, 2 }
 0x1d0   :  { %vm1533_vm0 = vcmp.ge.f32.partialorder %v1528_v39, 0.0  ;;  %v1538_v43 = vmul.f32 %v1537_v36, %v1528_v39  ;;  %v1506_v44 = vadd.f32 %v1505_v40, %v1504_v35 }
 0x1d1   :  { %vm1534_vm1 = vcmp.ge.f32.partialorder %v1529_v41, 0.0  ;;  %v1539_v45 = vmul.f32 %v1537_v36, %v1529_v41  ;;  %v1513_v46 = vadd.f32 %v1512_v42, %v1511_v38 }
 0x1d2   :  { %v1542_v47 = vsel %vm1533_vm0, %v1528_v39, %v1538_v43  ;;  %v1507_v48 = vrot.slane %v1506_v44, 1 }
 0x1d3   :  { %v1543_v49 = vsel %vm1534_vm1, %v1529_v41, %v1539_v45  ;;  %v1514_v50 = vrot.slane %v1513_v46, 1 }
 0x1d4   :  { %v1508_v51 = vadd.f32 %v1507_v48, %v1506_v44  ;;  %v1550_v52 = vcombine.low %v1542_v47, %v1543_v49 }
 0x1d5   :  { %v1515_v55 = vadd.f32 %v1514_v50, %v1513_v46 }
 0x1d6   :  { %v1530_v56 = vadd.f32 %v1521_v29, %v1508_v51  ;;  %v1557_v2 = vrot.slane %v1550_v52, %v1556_v63 }
 0x1d7   :  { %v1531_v57 = vadd.f32 %v1525_v32, %v1515_v55 }
 0x1d8   :  { %vm1535_vm2 = vcmp.ge.f32.partialorder %v1530_v56, 0.0  ;;  %v1540_v58 = vmul.f32 %v1537_v36, %v1530_v56 }
 0x1d9   :  { %vm1536_vm3 = vcmp.ge.f32.partialorder %v1531_v57, 0.0  ;;  %v1541_v60 = vmul.f32 %v1537_v36, %v1531_v57 }
 0x1da   :  { %v1544_v61 = vsel %vm1535_vm2, %v1530_v56, %v1540_v58 }
 0x1db   :  { %v1545_v62 = vsel %vm1536_vm3, %v1531_v57, %v1541_v60 }
 0x1dc   :  { %v1558_v0 = vcombine.low %v1544_v61, %v1545_v62 }
 0x1de   :  { %v1565_v1 = vrot.slane %v1558_v0, %v1556_v63 }
 0x1e0   :  { %v1570_v3 = vrot.slane %v1565_v1, 7 }
 0x1e2   :  { %v1572_v4 = vsel %vm1571_vm4, %v1570_v3, %v1557_v2 }
 0x1e3   :  { %v1574_v5 = vsel %vm1573_vm5, %v1570_v3, %v1572_v4 }
 0x1e4   :  { %v1576_v6 = vsel %vm1575_vm6, %v1570_v3, %v1574_v5 }
 0x1e5   :  { %v1578_v8 = vsel %vm1577_vm7, %v1570_v3, %v1576_v6 }
 0x1e6   :  { %1580 = vst [vmem:[#allocation8] sm:$0xf] %v1578_v8 }
 0x1e7   :  { %2141 = shalt.err (!%p2138_p6)
}
 0x1e8   :  { %s2142_s22 = scalar_lea.hbm %s2238_s4, 64 }
 0x1e9   :  { %p2143_p7 = scmp.ne.s32.totalorder %s2238_s4, %s2142_s22  ;;  %p2146_p8 = scmp.lt.u32.totalorder %s2142_s22, %s2238_s4 }
 0x1eb   :  { %p2148_p9 = pnand %p2146_p8, %p2143_p7 }
 0x1ed   :  { %2151 = shalt.err (!%p2148_p9)
}
 0x1ee   :  { %1590 = dma.vmem_to_hbm [thread:$0]  %s1588_s3, 64, %s2238_s4, [#allocation5]  }
 0x1ef   :  { %2156 = dma.done.wait [#allocation5], 64  }
 0x1f0   :  { %2157 = vsyncadd [#allocation5], 4294967232 }
 0x1f1   :  { %1594 = vsyncpa [#allocation4], 1 }
 0x1f2   :  { %1595 = vsyncpa [#allocation7], 1 }
 0x1f3   :  { %1596 = vsyncpa [#allocation5], 1 }

</bundles_post_ra>
